<compile_context>
chip_gen: v5e
topology: v5e:2x2
jax: 0.10.0
libtpu: 0.0.40
codegen_flags: <defaults>
</compile_context>

<pallas_src>
import jax
import jax.numpy as jnp
from jax import lax
from jax.experimental import pallas as pl
from jax.experimental.pallas import tpu as pltpu

IN_DIM = 8
HIDDEN = 128
N_ACTIONS = 4
HEADS_PAD = 8          # rows 0..3 action logits, row 4 value, rows 5..7 dead padding
NEG_BIG = -1e30        # baked into the padded head-bias rows -> exp() underflows to 0
MAX_TILE_B = 8192      # batch rows per grid step (activations ~8 MiB f32, well in VMEM)


def policy_kernel(xt_ref, w1_ref, b1_ref, wh_ref, bh_ref, out_ref):
    # Transposed layout: every array is (features, batch_tile) so the batch axis is
    # the 128-wide lane axis -> lane-dense loads, compute and stores throughout.
    xt = xt_ref[...].astype(jnp.bfloat16)                               # (8, tb)

    # layer 1: h = relu(W1 @ x + b1); W1 is the PyTorch (128, 8) weight as-is.
    h = jnp.dot(w1_ref[...], xt, preferred_element_type=jnp.float32) + b1_ref[...]
    h = jnp.maximum(h, 0.0)                                             # (128, tb) f32

    # fused heads: one MXU pass -> rows 0..3 logits, row 4 value, rows 5..7 ~ -1e30
    heads = jnp.dot(wh_ref[...], h.astype(jnp.bfloat16),
                    preferred_element_type=jnp.float32) + bh_ref[...]   # (8, tb)

    # numerically-stable softmax over the 4 action rows (sublane axis).  Pad rows
    # already carry NEG_BIG via the bias; only the value row needs a runtime mask.
    row = lax.broadcasted_iota(jnp.int32, heads.shape, 0)
    logits = jnp.where(row == N_ACTIONS, NEG_BIG, heads)
    m = jnp.max(logits, axis=0, keepdims=True)                          # (1, tb)
    e = jnp.exp(logits - m)                                             # value/pad rows -> 0
    s = jnp.sum(e, axis=0, keepdims=True)
    probs = e / s                                                       # exact normalization

    # rows 0..3 = probs, row 4 = value, rows 5..7 = 0 (probs are already exactly 0 there)
    out_ref[...] = jnp.where(row == N_ACTIONS, heads, probs)


def policy_forward(x, w1, b1, w_heads, b_heads, *, tile_b=None, min_tiles=1):
    """Actor-critic forward pass.

    x:        (B, 8) float32
    w1:       (128, 8)  bf16   (PyTorch affine1.weight layout)
    b1:       (128, 1)  f32
    w_heads:  (8, 128)  bf16   rows 0..3 = action_head.weight, row 4 = value_head.weight
    b_heads:  (8, 1)    f32    rows 0..3/4 = biases, rows 5..7 = NEG_BIG
    min_tiles: set to 2 on v7x so the "parallel" batch axis engages both TensorCores.

    Returns (action_probs (B, 4) f32, state_values (B, 1) f32).
    """
    B = x.shape[0]
    xt = x.T                                                   # (8, B): batch in lanes

    # Tile heuristic: one grid step whenever possible; otherwise 128-aligned lane tiles.
    if tile_b is None:
        tiles_wanted = max(int(min_tiles), 1)
        tile_b = (B + tiles_wanted - 1) // tiles_wanted
    if tile_b >= B:
        tile_b, padded_B = B, B                                # block == full extent, no pad
    else:
        tile_b = max(128, min(MAX_TILE_B, ((tile_b + 127) // 128) * 128))
        if tile_b >= B:
            tile_b, padded_B = B, B
        else:
            padded_B = ((B + tile_b - 1) // tile_b) * tile_b
            if padded_B != B:
                xt = jnp.pad(xt, ((0, 0), (0, padded_B - B)))

    grid = (padded_B // tile_b,)

    out_t = pl.pallas_call(
        policy_kernel,
        out_shape=jax.ShapeDtypeStruct((HEADS_PAD, padded_B), jnp.float32),
        grid=grid,
        in_specs=[
            pl.BlockSpec((IN_DIM, tile_b), lambda i: (0, i)),       # x^T, batch tiled on lanes
            pl.BlockSpec((HIDDEN, IN_DIM), lambda i: (0, 0)),       # tiny weights stay resident
            pl.BlockSpec((HIDDEN, 1), lambda i: (0, 0)),
            pl.BlockSpec((HEADS_PAD, HIDDEN), lambda i: (0, 0)),
            pl.BlockSpec((HEADS_PAD, 1), lambda i: (0, 0)),
        ],
        out_specs=pl.BlockSpec((HEADS_PAD, tile_b), lambda i: (0, i)),
        compiler_params=pltpu.CompilerParams(
            dimension_semantics=("parallel",)),                      # megacore on v7x
    )(xt, w1, b1, w_heads, b_heads)

    probs = out_t[:N_ACTIONS, :B].T                                  # (B, 4)
    value = out_t[N_ACTIONS:N_ACTIONS + 1, :B].T                     # (B, 1)
    return probs, value


def init_params(key):
    """Deterministic synthetic parameters matching nn.Linear's default init, kept in
    their native PyTorch (out, in) layout, with the two heads fused/padded to 8 rows."""
    k1, k2, k3, k4, k5, k6 = jax.random.split(key, 6)

    def u(k, shape, fan_in):    # nn.Linear default init ~ U(-1/sqrt(fan_in), 1/sqrt(fan_in))
        lim = 1.0 / jnp.sqrt(jnp.float32(fan_in))
        return jax.random.uniform(k, shape, jnp.float32, -lim, lim)

    w1 = u(k1, (HIDDEN, IN_DIM), IN_DIM)          # affine1.weight
    b1 = u(k2, (HIDDEN,), IN_DIM)                 # affine1.bias
    wa = u(k3, (N_ACTIONS, HIDDEN), HIDDEN)       # action_head.weight
    ba = u(k4, (N_ACTIONS,), HIDDEN)              # action_head.bias
    wv = u(k5, (1, HIDDEN), HIDDEN)               # value_head.weight
    bv = u(k6, (1,), HIDDEN)                      # value_head.bias

    n_pad = HEADS_PAD - N_ACTIONS - 1
    w_heads = jnp.concatenate([wa, wv, jnp.zeros((n_pad, HIDDEN), jnp.float32)], axis=0)
    # pad-lane masking baked into the bias: dead rows get NEG_BIG so exp() -> 0 in-kernel
    b_heads = jnp.concatenate([ba, bv, jnp.full((n_pad,), NEG_BIG, jnp.float32)], axis=0)

    packed = (w1.astype(jnp.bfloat16),            # bf16 MXU operands
              b1.reshape(HIDDEN, 1),
              w_heads.astype(jnp.bfloat16),
              b_heads.reshape(HEADS_PAD, 1))
    raw = (w1, b1, wa, ba, wv, bv)
    return packed, raw


if __name__ == "__main__":
    key = jax.random.PRNGKey(0)
    key_x, key_p = jax.random.split(key)

    packed_params, raw_params = init_params(key_p)
    w1, b1, wa, ba, wv, bv = raw_params

    def reference_f32(x):        # exact PyTorch-module semantics (f32)
        h = jnp.maximum(x @ w1.T + b1, 0.0)
        return jax.nn.softmax(h @ wa.T + ba, axis=-1), h @ wv.T + bv

    def reference_bf16(x):       # mimics the kernel's bf16 MXU operands / f32 accumulate
        h = jnp.dot(x.astype(jnp.bfloat16), w1.T.astype(jnp.bfloat16),
                    preferred_element_type=jnp.float32) + b1
        h = jnp.maximum(h, 0.0)
        logits = jnp.dot(h.astype(jnp.bfloat16), wa.T.astype(jnp.bfloat16),
                         preferred_element_type=jnp.float32) + ba
        value = jnp.dot(h.astype(jnp.bfloat16), wv.T.astype(jnp.bfloat16),
                        preferred_element_type=jnp.float32) + bv
        return jax.nn.softmax(logits, axis=-1), value

    # Small batch: single grid step, block == full extent, no padding.
    batch = 64
    x = jax.random.normal(key_x, (batch, IN_DIM), jnp.float32)
    probs, value = policy_forward(x, *packed_params)
    jax.block_until_ready((probs, value))

    assert probs.shape == (batch, N_ACTIONS)
    assert value.shape == (batch, 1)
    # exact normalization -> rows sum to 1 to fp eps
    assert bool(jnp.allclose(jnp.sum(probs, axis=-1), 1.0, atol=1e-4))

    p16, v16 = reference_bf16(x)
    assert bool(jnp.allclose(probs, p16, atol=2e-3))
    assert bool(jnp.allclose(value, v16, atol=2e-3))
    pf, vf = reference_f32(x)
    assert bool(jnp.allclose(probs, pf, atol=5e-2))
    assert bool(jnp.allclose(value, vf, atol=5e-2))

    # Ragged multi-tile path: 128-wide lane tiles + tail padding + "parallel" batch axis.
    batch2 = 272
    x2 = jax.random.normal(key_x, (batch2, IN_DIM), jnp.float32)
    probs2, value2 = policy_forward(x2, *packed_params, tile_b=128)
    jax.block_until_ready((probs2, value2))
    assert probs2.shape == (batch2, N_ACTIONS) and value2.shape == (batch2, 1)
    p16b, v16b = reference_bf16(x2)
    assert bool(jnp.allclose(probs2, p16b, atol=2e-3))
    assert bool(jnp.allclose(value2, v16b, atol=2e-3))

    print("KERNEL_OK")
</pallas_src>

<mosaic_0001>
module attributes {stable_mosaic.version = 11 : i64} {
  func.func @policy_kernel(%arg0: i32, %arg1: memref<8x64xf32, #tpu.memory_space<vmem>>, %arg2: memref<128x8xbf16, #tpu.memory_space<vmem>>, %arg3: memref<128x1xf32, #tpu.memory_space<vmem>>, %arg4: memref<8x128xbf16, #tpu.memory_space<vmem>>, %arg5: memref<8x1xf32, #tpu.memory_space<vmem>>, %arg6: memref<8x64xf32, #tpu.memory_space<vmem>>) attributes {dimension_semantics = [#tpu.dimension_semantics<parallel>], iteration_bounds = array<i64: 1>, scalar_prefetch = 0 : i64, scratch_operands = 0 : i64, tpu.core_type = #tpu.core_type<tc>, window_params = [{transform_indices = @transform_0, window_bounds = array<i64: 8, 64>}, {pipeline_mode = #tpu.pipeline_mode<synchronous>, transform_indices = @transform_1, window_bounds = array<i64: 128, 8>}, {pipeline_mode = #tpu.pipeline_mode<synchronous>, transform_indices = @transform_2, window_bounds = array<i64: 128, 1>}, {pipeline_mode = #tpu.pipeline_mode<synchronous>, transform_indices = @transform_3, window_bounds = array<i64: 8, 128>}, {pipeline_mode = #tpu.pipeline_mode<synchronous>, transform_indices = @transform_4, window_bounds = array<i64: 8, 1>}, {transform_indices = @transform_5, window_bounds = array<i64: 8, 64>}]} {
    %c0 = arith.constant 0 : index
    %c0_0 = arith.constant 0 : index
    %0 = vector.load %arg1[%c0, %c0_0] : memref<8x64xf32, #tpu.memory_space<vmem>>, vector<8x64xf32>
    %1 = arith.truncf %0 : vector<8x64xf32> to vector<8x64xbf16>
    %c0_1 = arith.constant 0 : index
    %c0_2 = arith.constant 0 : index
    %2 = vector.load %arg2[%c0_1, %c0_2] : memref<128x8xbf16, #tpu.memory_space<vmem>>, vector<128x8xbf16>
    %cst = arith.constant dense<0.000000e+00> : vector<128x64xf32>
    %3 = tpu.matmul %2, %1, %cst {dimension_numbers = #tpu.dot_dimension_numbers<[1], [0], [0], [1], [0, 0, 1, 1], [], []>} : vector<128x8xbf16>, vector<8x64xbf16>, vector<128x64xf32> -> vector<128x64xf32>
    %c0_3 = arith.constant 0 : index
    %c0_4 = arith.constant 0 : index
    %4 = vector.load %arg3[%c0_3, %c0_4] : memref<128x1xf32, #tpu.memory_space<vmem>>, vector<128x1xf32>
    %5 = vector.broadcast %4 : vector<128x1xf32> to vector<128x64xf32>
    %6 = arith.addf %3, %5 : vector<128x64xf32>
    %cst_5 = arith.constant 0.000000e+00 : f32
    %7 = vector.broadcast %cst_5 : f32 to vector<128x64xf32>
    %8 = arith.maximumf %6, %7 : vector<128x64xf32>
    %c0_6 = arith.constant 0 : index
    %c0_7 = arith.constant 0 : index
    %9 = vector.load %arg4[%c0_6, %c0_7] : memref<8x128xbf16, #tpu.memory_space<vmem>>, vector<8x128xbf16>
    %10 = arith.truncf %8 : vector<128x64xf32> to vector<128x64xbf16>
    %cst_8 = arith.constant dense<0.000000e+00> : vector<8x64xf32>
    %11 = tpu.matmul %9, %10, %cst_8 {dimension_numbers = #tpu.dot_dimension_numbers<[1], [0], [0], [1], [0, 0, 1, 1], [], []>} : vector<8x128xbf16>, vector<128x64xbf16>, vector<8x64xf32> -> vector<8x64xf32>
    %c0_9 = arith.constant 0 : index
    %c0_10 = arith.constant 0 : index
    %12 = vector.load %arg5[%c0_9, %c0_10] : memref<8x1xf32, #tpu.memory_space<vmem>>, vector<8x1xf32>
    %13 = vector.broadcast %12 : vector<8x1xf32> to vector<8x64xf32>
    %14 = arith.addf %11, %13 : vector<8x64xf32>
    %15 = tpu.iota {dimensions = array<i32: 0>} : vector<8x64xi32>
    %c4_i32 = arith.constant 4 : i32
    %16 = vector.broadcast %c4_i32 : i32 to vector<8x64xi32>
    %17 = arith.cmpi eq, %15, %16 : vector<8x64xi32>
    %cst_11 = arith.constant -1.000000e+30 : f32
    %18 = vector.broadcast %cst_11 : f32 to vector<8x64xf32>
    %19 = arith.select %17, %18, %14 : vector<8x64xi1>, vector<8x64xf32>
    %cst_12 = arith.constant dense<0xFF800000> : vector<64xf32>
    %20 = vector.multi_reduction <maximumf>, %19, %cst_12 [0] : vector<8x64xf32> to vector<64xf32>
    %21 = vector.shape_cast %20 : vector<64xf32> to vector<1x64xf32>
    %22 = vector.broadcast %21 : vector<1x64xf32> to vector<8x64xf32>
    %23 = arith.subf %19, %22 : vector<8x64xf32>
    %24 = math.exp %23 : vector<8x64xf32>
    %cst_13 = arith.constant dense<0.000000e+00> : vector<64xf32>
    %25 = vector.multi_reduction <add>, %24, %cst_13 [0] : vector<8x64xf32> to vector<64xf32>
    %26 = vector.shape_cast %25 : vector<64xf32> to vector<1x64xf32>
    %27 = vector.broadcast %26 : vector<1x64xf32> to vector<8x64xf32>
    %28 = arith.divf %24, %27 : vector<8x64xf32>
    %c4_i32_14 = arith.constant 4 : i32
    %29 = vector.broadcast %c4_i32_14 : i32 to vector<8x64xi32>
    %30 = arith.cmpi eq, %15, %29 : vector<8x64xi32>
    %31 = arith.select %30, %14, %28 : vector<8x64xi1>, vector<8x64xf32>
    %c0_15 = arith.constant 0 : index
    %c0_16 = arith.constant 0 : index
    %32 = vector.load %arg6[%c0_15, %c0_16] : memref<8x64xf32, #tpu.memory_space<vmem>>, vector<8x64xf32>
    tpu.vector_store %arg6[%c0_15, %c0_16], %31 {strides = array<i32>} : memref<8x64xf32, #tpu.memory_space<vmem>>, vector<8x64xf32>,
    return
  }
  func.func @transform_0(%arg0: i32) -> (i32, i32) {
    %c0_i32 = arith.constant 0 : i32
    %c0_i32_0 = arith.constant 0 : i32
    return %c0_i32, %arg0 : i32, i32
  }
  func.func @transform_1(%arg0: i32) -> (i32, i32) {
    %c0_i32 = arith.constant 0 : i32
    %c0_i32_0 = arith.constant 0 : i32
    %c0_i32_1 = arith.constant 0 : i32
    return %c0_i32, %c0_i32_0 : i32, i32
  }
  func.func @transform_2(%arg0: i32) -> (i32, i32) {
    %c0_i32 = arith.constant 0 : i32
    %c0_i32_0 = arith.constant 0 : i32
    %c0_i32_1 = arith.constant 0 : i32
    return %c0_i32, %c0_i32_0 : i32, i32
  }
  func.func @transform_3(%arg0: i32) -> (i32, i32) {
    %c0_i32 = arith.constant 0 : i32
    %c0_i32_0 = arith.constant 0 : i32
    %c0_i32_1 = arith.constant 0 : i32
    return %c0_i32, %c0_i32_0 : i32, i32
  }
  func.func @transform_4(%arg0: i32) -> (i32, i32) {
    %c0_i32 = arith.constant 0 : i32
    %c0_i32_0 = arith.constant 0 : i32
    %c0_i32_1 = arith.constant 0 : i32
    return %c0_i32, %c0_i32_0 : i32, i32
  }
  func.func @transform_5(%arg0: i32) -> (i32, i32) {
    %c0_i32 = arith.constant 0 : i32
    %c0_i32_0 = arith.constant 0 : i32
    return %c0_i32, %arg0 : i32, i32
  }
}

</mosaic_0001>

<bundles_post_ra>
// kernel: tpu_custom_call.1
= control target key start
LH: loop header
LB: loop body
LE: loop exit
PB: predicated region body
PF: predicated region fallthrough
CT: control target
= control target key end

     0   :  { %vm201_vm0 = vcmask 1043456   ;;  %v438_v2 = vmov 0   ;;  %vm176_vm1 = vcmask 64512   ;;  %s573_s0 = inlined_call_operand.vmem [shape: f32[8,64], index: 0, kind: input, shape index: {}]   ;;  %s574_s1 = inlined_call_operand.vmem [shape: bf16[128,8], index: 1, kind: input, shape index: {}]   ;;  %s575_s2 = inlined_call_operand.vmem [shape: f32[128,1], index: 2, kind: input, shape index: {}]   ;;  %s576_s3 = inlined_call_operand.vmem [shape: bf16[8,128], index: 3, kind: input, shape index: {}]   ;;  %s577_s4 = inlined_call_operand.vmem [shape: f32[8,1], index: 4, kind: input, shape index: {}]   ;;  %s578_s5 = inlined_call_operand.hbm [shape: f32[8,64], index: 5, kind: output, shape index: {}]  }
   0x1   :  { %v54_v0 = vld [vmem:[%s575_s2 + $0x70] sm:$0xff]  ;;  %v22_v1 = vld [vmem:[%s573_s0] sm:$0xff]  ;;  %405 = vset.pattern.permute.xlu0 %v438_v2  ;;  %406 = vset.pattern.permute.xlu1 %v438_v2  ;;  %v396_v7 = vld [vmem:[%s574_s1 + $0x18] sm:$0xff] }
   0x2   :  { %v23_v3 = vpack.c.bf16 %v22_v1, %v22_v1  ;;  %v52_v4 = vld [vmem:[%s575_s2 + $0x60] sm:$0xff]  ;;  %128 = vperm.xlu0 %405, %v54_v0   ;;  %407 = vset.pattern.permute.xlu2 %v438_v2  ;;  %v399_v8 = vld [vmem:[%s574_s1 + $0x30] sm:$0xff] }
   0x3   :  { %118 = vperm.xlu1 %406, %v52_v4   ;;  %v393_v6 = vld [vmem:[%s574_s1] sm:$0xff]  ;;  %v50_v9 = vld [vmem:[%s575_s2 + $0x50] sm:$0xff] }
   0x4   :  { %v203_v5 = vsel %vm201_vm0, %v23_v3, 0  ;;  %108 = vperm.xlu2 %407, %v50_v9  }
   0x5   :  { %212 = vmatpush.bf16.msra.mxu0 %v203_v5  ;;  %401 = vmatpush.bf16.msra.mxu2 %v203_v5 }
   0x6   :  { %402 = vmatpush.bf16.msra.mxu3 %v203_v5 }
   0x7   :  { %10 = vsyncpa [#allocation3], 0  ;;  %v55_v10 = vld [vmem:[%s575_s2 + $0x78] sm:$0xff]  ;;  %v53_v11 = vld [vmem:[%s575_s2 + $0x68] sm:$0xff]  ;;  %vm302_vm3 = vcmask 523264   ;;  %s344_s20 = sshll.u32 %s578_s5, 4  ;;  %s345_s20 = int_to_ptr.hbm [resolvable:$true] %s344_s20 }
   0x8   :  { %385 = vmatmul.msk.bf16.vlgmr.msra.gmra.mxu0 %vm176_vm1, %v393_v6  ;;  %388 = vmatmul.msk.bf16.vlgmr.msra.gmra.mxu2 %vm176_vm1, %v396_v7  ;;  %v51_v12 = vld [vmem:[%s575_s2 + $0x58] sm:$0xff]  ;;  %v48_v13 = vld [vmem:[%s575_s2 + $0x40] sm:$0xff]  ;;  %v49_v14 = vld [vmem:[%s575_s2 + $0x48] sm:$0xff] }
   0x9   :  { %391 = vmatmul.msk.bf16.vlgmr.msra.gmra.mxu3 %vm176_vm1, %v399_v8  ;;  %v46_v15 = vld [vmem:[%s575_s2 + $0x30] sm:$0xff]  ;;  %v394_v16 = vld [vmem:[%s574_s1 + $0x8] sm:$0xff]  ;;  %v397_v17 = vld [vmem:[%s574_s1 + $0x20] sm:$0xff] }
   0xa   :  { %133 = vperm.xlu0 %405, %v55_v10   ;;  %v400_v18 = vld [vmem:[%s574_s1 + $0x38] sm:$0xff]  ;;  %v44_v20 = vld [vmem:[%s575_s2 + $0x20] sm:$0xff]  ;;  %v45_v21 = vld [vmem:[%s575_s2 + $0x28] sm:$0xff] }
   0xb   :  { %123 = vperm.xlu1 %406, %v53_v11   ;;  %v47_v19 = vld [vmem:[%s575_s2 + $0x38] sm:$0xff]  ;;  %v42_v22 = vld [vmem:[%s575_s2 + $0x10] sm:$0xff]  ;;  %v40_v24 = vld [vmem:[%s575_s2] sm:$0xff] }
   0xc   :  { %113 = vperm.xlu2 %407, %v51_v12   ;;  %v43_v23 = vld [vmem:[%s575_s2 + $0x18] sm:$0xff]  ;;  %v395_v25 = vld [vmem:[%s574_s1 + $0x10] sm:$0xff]  ;;  %v398_v26 = vld [vmem:[%s574_s1 + $0x28] sm:$0xff] }
   0xd   :  { %v41_v27 = vld [vmem:[%s575_s2 + $0x8] sm:$0xff]  ;;  %v279_v28 = vld [vmem:[%s577_s4] sm:$0xff] }
  0x12   :  { %98 = vperm.xlu0 %405, %v48_v13  }
  0x13   :  { %103 = vperm.xlu1 %406, %v49_v14  }
  0x14   :  { %88 = vperm.xlu2 %407, %v46_v15  }
  0x18   :  { %386 = vmatmul.msk.bf16.gmra.mxu0 %vm176_vm1, %v394_v16  ;;  %389 = vmatmul.msk.bf16.gmra.mxu2 %vm176_vm1, %v397_v17 }
  0x19   :  { %392 = vmatmul.msk.bf16.gmra.mxu3 %vm176_vm1, %v400_v18 }
  0x1a   :  { %93 = vperm.xlu0 %405, %v47_v19  }
  0x1b   :  { %78 = vperm.xlu1 %406, %v44_v20  }
  0x1c   :  { %83 = vperm.xlu2 %407, %v45_v21  }
  0x22   :  { %68 = vperm.xlu0 %405, %v42_v22  }
  0x23   :  { %73 = vperm.xlu1 %406, %v43_v23  }
  0x24   :  { %58 = vperm.xlu2 %407, %v40_v24  }
  0x28   :  { %387 = vmatmul.msk.bf16.gmra.mxu0 %vm176_vm1, %v395_v25  ;;  %390 = vmatmul.msk.bf16.gmra.mxu2 %vm176_vm1, %v398_v26 }
  0x2a   :  { %63 = vperm.xlu0 %405, %v41_v27  }
  0x2b   :  { %282 = vperm.xlu1 %406, %v279_v28  }
  0x5e   :  { %v109_v38 = vpop.permute.xlu2 %108 }
  0x66   :  { %v114_v47 = vpop.permute.xlu2 %113 }
  0x6e   :  { %v89_v61 = vpop.permute.xlu2 %88 }
  0x74   :  { %v129_v32 = vpop.permute.xlu0 %128 }
  0x75   :  { %v119_v36 = vpop.permute.xlu1 %118 }
  0x76   :  { %v84_v11 = vpop.permute.xlu2 %83 }
  0x7c   :  { %v134_v37 = vpop.permute.xlu0 %133 }
  0x7d   :  { %v124_v42 = vpop.permute.xlu1 %123 }
  0x7e   :  { %v59_v27 = vpop.permute.xlu2 %58 }
  0x84   :  { %v99_v43 = vpop.permute.xlu0 %98 }
  0x85   :  { %v556_v29 = vpop.f32.mrf.mxu0  ;;  %v104_v57 = vpop.permute.xlu1 %103 }
  0x8b   :  { %v229_v30 = vpop.f32.mrf.mxu2 }
  0x8c   :  { %v244_v31 = vpop.f32.mrf.mxu3  ;;  %v94_v59 = vpop.permute.xlu0 %93  ;;  %v230_v13 = vadd.f32 %v229_v30, %v89_v61 }
  0x8d   :  { %v558_v33 = vpop.f32.mrf.mxu0  ;;  %v245_v48 = vadd.f32 %v244_v31, %v119_v36  ;;  %v79_v3 = vpop.permute.xlu1 %78 }
  0x8e   :  { %v260_v18 = vmax.f32 %v230_v13, 0.0 }
  0x8f   :  { %v266_v54 = vmax.f32 %v245_v48, 0.0 }
  0x93   :  { %v231_v34 = vpop.f32.mrf.mxu2 }
  0x94   :  { %v246_v35 = vpop.f32.mrf.mxu3  ;;  %v69_v7 = vpop.permute.xlu0 %68  ;;  %v232_v8 = vadd.f32 %v231_v34, %v94_v59  ;;  %v215_v34 = vadd.f32 %v556_v29, %v59_v27 }
  0x95   :  { %v219_v39 = vpop.f32.mrf.mxu0  ;;  %v247_v49 = vadd.f32 %v246_v35, %v124_v42  ;;  %v74_v20 = vpop.permute.xlu1 %73 }
  0x96   :  { %v261_v15 = vmax.f32 %v232_v8, 0.0  ;;  %v220_v21 = vadd.f32 %v219_v39, %v69_v7  ;;  %v270_v39 = vld [vmem:[%s576_s3] sm:$0xf]  ;;  %s439_s3 = smov [#allocation2]  }
  0x97   :  { %v267_v55 = vmax.f32 %v247_v49, 0.0  ;;  %s342_s4 = sshll.u32 %s439_s3, 4  ;;  %s343_s4 = int_to_ptr.vmem [resolvable:$true] %s342_s4 }
  0x98   :  { %v274_v24 = vpack.c.bf16 %v261_v15, %v260_v18  ;;  %v256_v28 = vmax.f32 %v220_v21, 0.0 }
  0x99   :  { %v277_v60 = vpack.c.bf16 %v267_v55, %v266_v54 }
  0x9b   :  { %v234_v40 = vpop.f32.mrf.mxu2 }
  0x9c   :  { %v249_v41 = vpop.f32.mrf.mxu3  ;;  %v235_v4 = vadd.f32 %v234_v40, %v99_v43  ;;  %v64_v25 = vpop.permute.xlu0 %63  ;;  %v298_v40 = vlaneseq }
  0x9d   :  { %v250_v44 = vadd.f32 %v249_v41, %v129_v32  ;;  %v221_v50 = vpop.f32.mrf.mxu0  ;;  %v217_v30 = vadd.f32 %v558_v33, %v64_v25  ;;  %v283_v42 = vpop.permute.xlu1 %282 }
  0x9e   :  { %v262_v14 = vmax.f32 %v235_v4, 0.0  ;;  %v222_v22 = vadd.f32 %v221_v50, %v74_v20  ;;  %v299_v41 = vshrl.u32 %v298_v40, 7 }
  0x9f   :  { %v268_v52 = vmax.f32 %v250_v44, 0.0  ;;  %v255_v35 = vmax.f32 %v217_v30, 0.0 }
  0xa0   :  { %v257_v31 = vmax.f32 %v222_v22, 0.0  ;;  %vm300_vm2 = vcmp.eq.s32.totalorder %v299_v41, 4 }
  0xa2   :  { %v272_v36 = vpack.c.bf16 %v257_v31, %v256_v28 }
  0xa3   :  { %v236_v45 = vpop.f32.mrf.mxu2 }
  0xa4   :  { %v251_v46 = vpop.f32.mrf.mxu3  ;;  %v237_v1 = vadd.f32 %v236_v45, %v104_v57 }
  0xa5   :  { %v252_v51 = vadd.f32 %v251_v46, %v134_v37  ;;  %v224_v62 = vpop.f32.mrf.mxu0  ;;  %v254_v37 = vmax.f32 %v215_v34, 0.0 }
  0xa6   :  { %v263_v9 = vmax.f32 %v237_v1, 0.0  ;;  %v225_v19 = vadd.f32 %v224_v62, %v79_v3 }
  0xa7   :  { %v269_v53 = vmax.f32 %v252_v51, 0.0 }
  0xa8   :  { %v275_v17 = vpack.c.bf16 %v263_v9, %v262_v14  ;;  %v258_v26 = vmax.f32 %v225_v19, 0.0 }
  0xa9   :  { %v278_v56 = vpack.c.bf16 %v269_v53, %v268_v52 }
  0xab   :  { %285 = vmatpush.bf16.msra.mxu1 %v278_v56  ;;  %v239_v58 = vpop.f32.mrf.mxu2 }
  0xac   :  { %v240_v63 = vadd.f32 %v239_v58, %v109_v38  ;;  %v271_v38 = vpack.c.bf16 %v255_v35, %v254_v37 }
  0xad   :  { %v226_v12 = vpop.f32.mrf.mxu0 }
  0xae   :  { %v264_v5 = vmax.f32 %v240_v63, 0.0  ;;  %v227_v16 = vadd.f32 %v226_v12, %v84_v11 }
  0xaf   :  { %286 = vmatpush.bf16.msra.mxu1 %v277_v60 }
  0xb0   :  { %v259_v23 = vmax.f32 %v227_v16, 0.0 }
  0xb2   :  { %v273_v32 = vpack.c.bf16 %v259_v23, %v258_v26 }
  0xb3   :  { %v241_v0 = vpop.f32.mrf.mxu2 }
  0xb4   :  { %v242_v2 = vadd.f32 %v241_v0, %v114_v47 }
  0xb6   :  { %v265_v6 = vmax.f32 %v242_v2, 0.0 }
  0xb8   :  { %v276_v10 = vpack.c.bf16 %v265_v6, %v264_v5 }
  0xba   :  { %287 = vmatpush.bf16.msra.mxu1 %v276_v10 }
  0xbe   :  { %288 = vmatpush.bf16.msra.mxu1 %v275_v17 }
  0xc2   :  { %289 = vmatpush.bf16.msra.mxu1 %v274_v24 }
  0xc6   :  { %290 = vmatpush.bf16.msra.mxu1 %v273_v32 }
  0xca   :  { %291 = vmatpush.bf16.msra.mxu1 %v272_v36 }
  0xce   :  { %292 = vmatpush.bf16.msra.mxu1 %v271_v38 }
  0xd1   :  { %293 = vmatmul.bf16.vlgmr.msra.gmra.mxu1 %v270_v39 }
 0x14e   :  { %v294_v33 = vpop.f32.mrf.mxu1 }
 0x14f   :  { %v295_v43 = vadd.f32 %v294_v33, %v283_v42 }
 0x151   :  { %v301_v29 = vsel %vm300_vm2, -1e+30, %v295_v43 }
 0x152   :  { %v303_v44 = vsel %vm302_vm3, %v301_v29, -inf }
 0x153   :  { %v304_v45 = vrot.slane %v303_v44, 4 }
 0x155   :  { %v305_v46 = vmax.f32 %v303_v44, %v304_v45 }
 0x156   :  { %v296_v47 = vpop.f32.mrf.mxu1 }
 0x157   :  { %v306_v48 = vrot.slane %v305_v46, 2 }
 0x159   :  { %v307_v49 = vmax.f32 %v305_v46, %v306_v48 }
 0x15b   :  { %v308_v50 = vrot.slane %v307_v49, 1 }
 0x15d   :  { %v309_v51 = vmax.f32 %v307_v49, %v308_v50 }
 0x15f   :  { %v310_v52 = vsub.f32 %v301_v29, %v309_v51 }
 0x161   :  { %v311_v53 = vmul.f32 1.442695, %v310_v52 }
 0x163   :  { %408 = vpow2.f32 %v311_v53 }
 0x169   :  { %v409_v54 = vpop.eup %408 }
 0x16a   :  { %v313_v55 = vsel %vm302_vm3, %v409_v54, 0.0 }
 0x16b   :  { %v314_v56 = vrot.slane %v313_v55, 4 }
 0x16d   :  { %v315_v57 = vadd.f32 %v314_v56, %v313_v55 }
 0x16f   :  { %v316_v58 = vrot.slane %v315_v57, 2 }
 0x171   :  { %v317_v59 = vadd.f32 %v316_v58, %v315_v57 }
 0x173   :  { %v318_v60 = vrot.slane %v317_v59, 1 }
 0x175   :  { %v319_v61 = vadd.f32 %v318_v60, %v317_v59 }
 0x177   :  { %410 = vrcp.f32 %v319_v61  ;;  %v331_v1 = vand.u32 2147483648, %v319_v61  ;;  %v329_v3 = vand.u32 2147483647, %v319_v61  ;;  %vm325_vm5 = vweird.f32 %v319_v61 }
 0x179   :  { %v332_v5 = vor.u32 1.1754944e-38, %v331_v1  ;;  %vm330_vm7 = vcmp.eq.f32.partialorder %v329_v3, 8.507059e+37 }
 0x17d   :  { %v411_v62 = vpop.eup %410 }
 0x17e   :  { %v321_v63 = vmul.f32 %v411_v62, %v319_v61  ;;  %vm326_vm4 = vweird.f32 %v411_v62 }
 0x17f   :  { %vm327_vm6 = vmor %vm325_vm5, %vm326_vm4 }
 0x180   :  { %v322_v0 = vsub.f32 1.0, %v321_v63 }
 0x182   :  { %v323_v2 = vmul.f32 %v411_v62, %v322_v0 }
 0x184   :  { %v324_v4 = vadd.f32 %v411_v62, %v323_v2 }
 0x186   :  { %v328_v6 = vsel %vm327_vm6, %v411_v62, %v324_v4 }
 0x187   :  { %v333_v7 = vsel %vm330_vm7, %v332_v5, %v328_v6 }
 0x188   :  { %v334_v8 = vmul.f32 %v409_v54, %v333_v7 }
 0x18a   :  { %v335_v9 = vsel %vm300_vm2, %v295_v43, %v334_v8 }
 0x18b   :  { %336 = vst.msk [vmem:[#allocation2] sm:$0xff] %vm302_vm3, %v335_v9 }
 0x18c   :  { %347 = dma.vmem_to_hbm [thread:$0]  %s343_s4, 128, %s345_s20, [#allocation3]  }
 0x18d   :  { %436 = dma.done.wait [#allocation3], 128  }
 0x18e   :  { %437 = vsyncadd [#allocation3], 4294967168 }
 0x18f   :  { %352 = vsyncpa [#allocation3], 1 }

</bundles_post_ra>
